<compile_context>
chip_gen: v7x
topology: tpu7x:2x2x1
jax: 0.10.0
libtpu: 0.0.40
codegen_flags: <defaults>
</compile_context>

<pallas_src>
import functools

import jax
import jax.numpy as jnp
from jax.experimental import pallas as pl
from jax.experimental.pallas import tpu as pltpu


def _round_up(x, m):
    return ((x + m - 1) // m) * m


def _sublane_pack(dtype):
    # Sublane rows per 32-bit-packed vreg: f32 -> 8, bf16 -> 16, int8/fp8 -> 32.
    return max(8, 256 // (jnp.dtype(dtype).itemsize * 8))


def _conv_relu_kernel(x_ref, w_ref, b_ref, o_ref, *, ksize, stride, Wp, Le_p,
                      nb, cin_pad, cout):
    """One grid step: `nb` images, full (extended) spatial extent.

    x_ref: (nb*cin_pad, Lpad)   zero-padded, flattened images; image n occupies
                                sublane rows [n*cin_pad, (n+1)*cin_pad)
    w_ref: (cout, K*K*cin_pad)  im2col weight matrix (resident across the grid)
    b_ref: (cout, 1)
    o_ref: (nb*cout, Le_p)      extended flattened outputs; image n at rows
                                [n*cout, (n+1)*cout)
    """
    lpad = x_ref.shape[1]

    if stride == 1:
        # Every tap is a static, contiguous lane slice of the ref.
        def tap(n, off):
            return x_ref[n * cin_pad:(n + 1) * cin_pad, off:off + Le_p]
    else:
        # Phase-decimate once (`stride` strided loads total) so each of the
        # K*K taps below is a contiguous, unstrided lane slice instead of a
        # per-tap XLU deinterleave over the full width.
        plen = lpad // stride
        phases = [x_ref[:, pl.ds(p, plen, stride=stride)] for p in range(stride)]

        def tap(n, off):
            ph = phases[off % stride]
            base = off // stride
            return jax.lax.slice(ph, (n * cin_pad, base),
                                 ((n + 1) * cin_pad, base + Le_p))

    # im2col patches for all nb images, lane-concatenated: rows are
    # (tap-major, channel-minor) -- cin_pad is a multiple of the sublane pack
    # so the sublane concat is tile-aligned; Le_p is a multiple of 128 so the
    # lane concat across images is aligned too.
    cols = []
    for n in range(nb):
        parts = []
        for kh in range(ksize):
            for kw in range(ksize):
                parts.append(tap(n, kh * Wp + kw))
        cols.append(jnp.concatenate(parts, axis=0))        # (K*K*cin_pad, Le_p)
    patches = cols[0] if nb == 1 else jnp.concatenate(cols, axis=1)

    # Single MXU matmul covering all nb images; f32 accumulation + f32 epilogue.
    acc = jnp.dot(w_ref[...], patches, preferred_element_type=jnp.float32)
    acc = jnp.maximum(acc + b_ref[...], 0.0).astype(o_ref.dtype)

    for n in range(nb):  # static, lane-aligned stores (Le_p % 128 == 0)
        o_ref[n * cout:(n + 1) * cout, :] = acc[:, n * Le_p:(n + 1) * Le_p]


@functools.partial(
    jax.jit, static_argnames=("ksize", "padding", "stride", "images_per_step"))
def _cr_forward(x, w_packed, b_packed, *, ksize, padding, stride,
                images_per_step):
    N, Cin, H, W = x.shape
    out_dtype = x.dtype
    Cout = w_packed.shape[0]
    cin_pad = w_packed.shape[1] // (ksize * ksize)
    in_dtype = w_packed.dtype               # f32 or the chosen mxu_dtype

    Ho = (H + 2 * padding - ksize) // stride + 1
    Wo = (W + 2 * padding - ksize) // stride + 1
    Hp, Wp = H + 2 * padding, W + 2 * padding

    Le = Ho * Wp                            # extended flattened output length
    Le_p = _round_up(Le, 128)               # lane-aligned concat + unmasked vst
    # Flat-input slack: max tap offset (K-1)*(Wp+1) plus a stride*Le_p window.
    l_need = (ksize - 1) * (Wp + 1) + stride * Le_p
    rows = max(Hp, -(-l_need // Wp))
    while (rows * Wp) % stride:             # phase split needs stride | Lpad
        rows += 1
    Lpad = rows * Wp

    # ---- per-grid-step VMEM budget -> images per step ----------------------
    in_isz = jnp.dtype(in_dtype).itemsize
    per_img = (2 * cin_pad * Lpad * in_isz               # double-buffered input
               + 2 * Cout * Le_p * 4                      # double-buffered output
               + ksize * ksize * cin_pad * Le_p * in_isz  # patches (the big one)
               + Cout * Le_p * 4                          # f32 accumulator
               + (cin_pad * Lpad * in_isz if stride > 1 else 0))  # phase copies
    budget = 24 * 1024 * 1024
    if per_img > budget:
        # TODO(synk): Ho row-tiling (see module header) before using larger images.
        raise ValueError(
            f"per-image VMEM footprint {per_img} B exceeds the untiled-kernel "
            "budget; implement Ho row-tiling for this image size.")
    if images_per_step is None:
        nb = int(max(1, min(N, budget // per_img)))
    else:
        nb = int(max(1, min(N, images_per_step)))
    num_blocks = -(-N // nb)
    n_pad = num_blocks * nb
    fixed = Cout * (ksize * ksize * cin_pad * in_isz + 4)
    vmem_limit = int(min(64 * 1024 * 1024,
                         max(32 * 1024 * 1024, 2 * (nb * per_img + fixed))))

    # ---- one merged pad + free (contiguous) reshapes; no second pad ---------
    x_sp = jnp.pad(
        x, ((0, n_pad - N), (0, cin_pad - Cin),
            (padding, rows - H - padding), (padding, padding)))
    if in_dtype != x.dtype:
        x_sp = x_sp.astype(in_dtype)
    x_flat = x_sp.reshape(num_blocks, nb * cin_pad, Lpad)

    kernel = functools.partial(
        _conv_relu_kernel, ksize=ksize, stride=stride, Wp=Wp, Le_p=Le_p,
        nb=nb, cin_pad=cin_pad, cout=Cout)

    out_flat = pl.pallas_call(
        kernel,
        out_shape=jax.ShapeDtypeStruct((num_blocks, nb * Cout, Le_p), out_dtype),
        grid_spec=pltpu.PrefetchScalarGridSpec(
            num_scalar_prefetch=0,
            grid=(num_blocks,),
            in_specs=[
                pl.BlockSpec((None, nb * cin_pad, Lpad), lambda b: (b, 0, 0)),
                # Constant index_map -> weights/bias stay VMEM-resident.
                pl.BlockSpec((Cout, ksize * ksize * cin_pad), lambda b: (0, 0)),
                pl.BlockSpec((Cout, 1), lambda b: (0, 0)),
            ],
            out_specs=pl.BlockSpec((None, nb * Cout, Le_p), lambda b: (b, 0, 0)),
        ),
        compiler_params=pltpu.CompilerParams(
            dimension_semantics=("parallel",),
            vmem_limit_bytes=vmem_limit,
        ),
    )(x_flat, w_packed, b_packed)

    # Extended flat output -> NCHW.  Already channel-major: reshape + slice only.
    out = out_flat.reshape(n_pad, Cout, Le_p)[:N, :, :Le]
    out = out.reshape(N, Cout, Ho, Wp)[:, :, :, :Wo]
    return out


class CRPallas:
    """Pallas-TPU forward pass of the PyTorch `CR` module (Conv2d + ReLU).

    Weight/bias packing (OIHW transpose, channel pad to the MXU dtype's sublane
    packing, reshape to the im2col layout) is hoisted here so it is done once,
    not on every call.  `mxu_dtype=jnp.bfloat16` feeds the MXU in bf16 on
    v6e/v7x (f32 accumulation kept; numerics differ slightly from f32 PyTorch).
    `images_per_step`: images per grid step (default = whole batch, capped by a
    VMEM budget); set ceil(N/2) on v7x so both TensorCores get a grid step.
    """

    def __init__(self, weight_oihw, bias, *, padding, stride,
                 mxu_dtype=None, images_per_step=None):
        weight_oihw = jnp.asarray(weight_oihw, jnp.float32)
        bias = jnp.asarray(bias, jnp.float32)
        cout, cin, k, k2 = weight_oihw.shape
        assert k == k2, "only square kernels supported"
        self._static = dict(ksize=k, padding=padding, stride=stride,
                            images_per_step=images_per_step)
        compute_dtype = jnp.float32 if mxu_dtype is None else mxu_dtype
        cin_pad = _round_up(cin, _sublane_pack(compute_dtype))
        w_t = jnp.transpose(weight_oihw, (0, 2, 3, 1))          # (Cout, K, K, Cin)
        w_t = jnp.pad(w_t, ((0, 0), (0, 0), (0, 0), (0, cin_pad - cin)))
        self.w_packed = jax.device_put(
            w_t.reshape(cout, k * k * cin_pad).astype(compute_dtype))
        self.b_packed = jax.device_put(bias.reshape(cout, 1))

    def __call__(self, x):
        return _cr_forward(x, self.w_packed, self.b_packed, **self._static)


def _reference(x_nchw, weight_oihw, bias, *, padding, stride):
    out = jax.lax.conv_general_dilated(
        x_nchw, weight_oihw,
        window_strides=(stride, stride),
        padding=[(padding, padding), (padding, padding)],
        dimension_numbers=("NCHW", "OIHW", "NCHW"))
    return jnp.maximum(out + bias.reshape(1, -1, 1, 1), 0.0)


if __name__ == "__main__":
    # Module hyperparameters: CR(in_channel=4, out_channel=8, ksize=3, padding=1, stride=1)
    in_channel, out_channel = 4, 8
    ksize, padding, stride = 3, 1, 1

    key = jax.random.PRNGKey(0)
    kx, kw, kb = jax.random.split(key, 3)

    x = jax.random.normal(kx, (2, in_channel, 16, 16), dtype=jnp.float32)
    weight = jax.random.normal(
        kw, (out_channel, in_channel, ksize, ksize), dtype=jnp.float32) * 0.1
    bias = jax.random.normal(kb, (out_channel,), dtype=jnp.float32) * 0.1

    cr = CRPallas(weight, bias, padding=padding, stride=stride)
    out = jax.block_until_ready(cr(x))

    ref = _reference(x, weight, bias, padding=padding, stride=stride)
    assert out.shape == ref.shape, (out.shape, ref.shape)
    assert jnp.allclose(out, ref, atol=1e-4, rtol=1e-4), "mismatch vs reference conv"

    print("KERNEL_OK")
</pallas_src>

<mosaic_0001>
module attributes {stable_mosaic.version = 11 : i64} {
  func.func @_conv_relu_kernel(%arg0: i32, %arg1: memref<1x16x432xf32, #tpu.memory_space<vmem>>, %arg2: memref<8x72xf32, #tpu.memory_space<vmem>>, %arg3: memref<8x1xf32, #tpu.memory_space<vmem>>, %arg4: memref<1x16x384xf32, #tpu.memory_space<vmem>>) attributes {dimension_semantics = [#tpu.dimension_semantics<parallel>], iteration_bounds = array<i64: 1>, scalar_prefetch = 0 : i64, scratch_operands = 0 : i64, tpu.core_type = #tpu.core_type<tc>, window_params = [{transform_indices = @transform_0, window_bounds = array<i64: 1, 16, 432>}, {pipeline_mode = #tpu.pipeline_mode<synchronous>, transform_indices = @transform_1, window_bounds = array<i64: 8, 72>}, {pipeline_mode = #tpu.pipeline_mode<synchronous>, transform_indices = @transform_2, window_bounds = array<i64: 8, 1>}, {transform_indices = @transform_3, window_bounds = array<i64: 1, 16, 384>}]} {
    %c0 = arith.constant 0 : index
    %c0_0 = arith.constant 0 : index
    %c0_1 = arith.constant 0 : index
    %0 = vector.load %arg1[%c0, %c0_0, %c0_1] : memref<1x16x432xf32, #tpu.memory_space<vmem>>, vector<1x8x384xf32>
    %1 = vector.shape_cast %0 : vector<1x8x384xf32> to vector<8x384xf32>
    %c0_2 = arith.constant 0 : index
    %c0_3 = arith.constant 0 : index
    %c1 = arith.constant 1 : index
    %2 = vector.load %arg1[%c0_2, %c0_3, %c1] : memref<1x16x432xf32, #tpu.memory_space<vmem>>, vector<1x8x384xf32>
    %3 = vector.shape_cast %2 : vector<1x8x384xf32> to vector<8x384xf32>
    %c0_4 = arith.constant 0 : index
    %c0_5 = arith.constant 0 : index
    %c2 = arith.constant 2 : index
    %4 = vector.load %arg1[%c0_4, %c0_5, %c2] : memref<1x16x432xf32, #tpu.memory_space<vmem>>, vector<1x8x384xf32>
    %5 = vector.shape_cast %4 : vector<1x8x384xf32> to vector<8x384xf32>
    %c0_6 = arith.constant 0 : index
    %c0_7 = arith.constant 0 : index
    %c18 = arith.constant 18 : index
    %6 = vector.load %arg1[%c0_6, %c0_7, %c18] : memref<1x16x432xf32, #tpu.memory_space<vmem>>, vector<1x8x384xf32>
    %7 = vector.shape_cast %6 : vector<1x8x384xf32> to vector<8x384xf32>
    %c0_8 = arith.constant 0 : index
    %c0_9 = arith.constant 0 : index
    %c19 = arith.constant 19 : index
    %8 = vector.load %arg1[%c0_8, %c0_9, %c19] : memref<1x16x432xf32, #tpu.memory_space<vmem>>, vector<1x8x384xf32>
    %9 = vector.shape_cast %8 : vector<1x8x384xf32> to vector<8x384xf32>
    %c0_10 = arith.constant 0 : index
    %c0_11 = arith.constant 0 : index
    %c20 = arith.constant 20 : index
    %10 = vector.load %arg1[%c0_10, %c0_11, %c20] : memref<1x16x432xf32, #tpu.memory_space<vmem>>, vector<1x8x384xf32>
    %11 = vector.shape_cast %10 : vector<1x8x384xf32> to vector<8x384xf32>
    %c0_12 = arith.constant 0 : index
    %c0_13 = arith.constant 0 : index
    %c36 = arith.constant 36 : index
    %12 = vector.load %arg1[%c0_12, %c0_13, %c36] : memref<1x16x432xf32, #tpu.memory_space<vmem>>, vector<1x8x384xf32>
    %13 = vector.shape_cast %12 : vector<1x8x384xf32> to vector<8x384xf32>
    %c0_14 = arith.constant 0 : index
    %c0_15 = arith.constant 0 : index
    %c37 = arith.constant 37 : index
    %14 = vector.load %arg1[%c0_14, %c0_15, %c37] : memref<1x16x432xf32, #tpu.memory_space<vmem>>, vector<1x8x384xf32>
    %15 = vector.shape_cast %14 : vector<1x8x384xf32> to vector<8x384xf32>
    %c0_16 = arith.constant 0 : index
    %c0_17 = arith.constant 0 : index
    %c38 = arith.constant 38 : index
    %16 = vector.load %arg1[%c0_16, %c0_17, %c38] : memref<1x16x432xf32, #tpu.memory_space<vmem>>, vector<1x8x384xf32>
    %17 = vector.shape_cast %16 : vector<1x8x384xf32> to vector<8x384xf32>
    %18 = tpu.concatenate %1, %3, %5, %7, %9, %11, %13, %15, %17 in 0 : vector<8x384xf32>, vector<8x384xf32>, vector<8x384xf32>, vector<8x384xf32>, vector<8x384xf32>, vector<8x384xf32>, vector<8x384xf32>, vector<8x384xf32>, vector<8x384xf32> -> vector<72x384xf32>
    %c0_18 = arith.constant 0 : index
    %c8 = arith.constant 8 : index
    %c0_19 = arith.constant 0 : index
    %19 = vector.load %arg1[%c0_18, %c8, %c0_19] : memref<1x16x432xf32, #tpu.memory_space<vmem>>, vector<1x8x384xf32>
    %20 = vector.shape_cast %19 : vector<1x8x384xf32> to vector<8x384xf32>
    %c0_20 = arith.constant 0 : index
    %c8_21 = arith.constant 8 : index
    %c1_22 = arith.constant 1 : index
    %21 = vector.load %arg1[%c0_20, %c8_21, %c1_22] : memref<1x16x432xf32, #tpu.memory_space<vmem>>, vector<1x8x384xf32>
    %22 = vector.shape_cast %21 : vector<1x8x384xf32> to vector<8x384xf32>
    %c0_23 = arith.constant 0 : index
    %c8_24 = arith.constant 8 : index
    %c2_25 = arith.constant 2 : index
    %23 = vector.load %arg1[%c0_23, %c8_24, %c2_25] : memref<1x16x432xf32, #tpu.memory_space<vmem>>, vector<1x8x384xf32>
    %24 = vector.shape_cast %23 : vector<1x8x384xf32> to vector<8x384xf32>
    %c0_26 = arith.constant 0 : index
    %c8_27 = arith.constant 8 : index
    %c18_28 = arith.constant 18 : index
    %25 = vector.load %arg1[%c0_26, %c8_27, %c18_28] : memref<1x16x432xf32, #tpu.memory_space<vmem>>, vector<1x8x384xf32>
    %26 = vector.shape_cast %25 : vector<1x8x384xf32> to vector<8x384xf32>
    %c0_29 = arith.constant 0 : index
    %c8_30 = arith.constant 8 : index
    %c19_31 = arith.constant 19 : index
    %27 = vector.load %arg1[%c0_29, %c8_30, %c19_31] : memref<1x16x432xf32, #tpu.memory_space<vmem>>, vector<1x8x384xf32>
    %28 = vector.shape_cast %27 : vector<1x8x384xf32> to vector<8x384xf32>
    %c0_32 = arith.constant 0 : index
    %c8_33 = arith.constant 8 : index
    %c20_34 = arith.constant 20 : index
    %29 = vector.load %arg1[%c0_32, %c8_33, %c20_34] : memref<1x16x432xf32, #tpu.memory_space<vmem>>, vector<1x8x384xf32>
    %30 = vector.shape_cast %29 : vector<1x8x384xf32> to vector<8x384xf32>
    %c0_35 = arith.constant 0 : index
    %c8_36 = arith.constant 8 : index
    %c36_37 = arith.constant 36 : index
    %31 = vector.load %arg1[%c0_35, %c8_36, %c36_37] : memref<1x16x432xf32, #tpu.memory_space<vmem>>, vector<1x8x384xf32>
    %32 = vector.shape_cast %31 : vector<1x8x384xf32> to vector<8x384xf32>
    %c0_38 = arith.constant 0 : index
    %c8_39 = arith.constant 8 : index
    %c37_40 = arith.constant 37 : index
    %33 = vector.load %arg1[%c0_38, %c8_39, %c37_40] : memref<1x16x432xf32, #tpu.memory_space<vmem>>, vector<1x8x384xf32>
    %34 = vector.shape_cast %33 : vector<1x8x384xf32> to vector<8x384xf32>
    %c0_41 = arith.constant 0 : index
    %c8_42 = arith.constant 8 : index
    %c38_43 = arith.constant 38 : index
    %35 = vector.load %arg1[%c0_41, %c8_42, %c38_43] : memref<1x16x432xf32, #tpu.memory_space<vmem>>, vector<1x8x384xf32>
    %36 = vector.shape_cast %35 : vector<1x8x384xf32> to vector<8x384xf32>
    %37 = tpu.concatenate %20, %22, %24, %26, %28, %30, %32, %34, %36 in 0 : vector<8x384xf32>, vector<8x384xf32>, vector<8x384xf32>, vector<8x384xf32>, vector<8x384xf32>, vector<8x384xf32>, vector<8x384xf32>, vector<8x384xf32>, vector<8x384xf32> -> vector<72x384xf32>
    %38 = tpu.concatenate %18, %37 in 1 : vector<72x384xf32>, vector<72x384xf32> -> vector<72x768xf32>
    %c0_44 = arith.constant 0 : index
    %c0_45 = arith.constant 0 : index
    %39 = vector.load %arg2[%c0_44, %c0_45] : memref<8x72xf32, #tpu.memory_space<vmem>>, vector<8x72xf32>
    %cst = arith.constant dense<0.000000e+00> : vector<8x768xf32>
    %40 = tpu.matmul %39, %38, %cst {dimension_numbers = #tpu.dot_dimension_numbers<[1], [0], [0], [1], [0, 0, 1, 1], [], []>} : vector<8x72xf32>, vector<72x768xf32>, vector<8x768xf32> -> vector<8x768xf32>
    %c0_46 = arith.constant 0 : index
    %c0_47 = arith.constant 0 : index
    %41 = vector.load %arg3[%c0_46, %c0_47] : memref<8x1xf32, #tpu.memory_space<vmem>>, vector<8x1xf32>
    %42 = vector.broadcast %41 : vector<8x1xf32> to vector<8x768xf32>
    %43 = arith.addf %40, %42 : vector<8x768xf32>
    %cst_48 = arith.constant 0.000000e+00 : f32
    %44 = vector.broadcast %cst_48 : f32 to vector<8x768xf32>
    %45 = arith.maximumf %43, %44 : vector<8x768xf32>
    %46 = vector.extract_strided_slice %45 {offsets = [0, 0], sizes = [8, 384], strides = [1, 1]} : vector<8x768xf32> to vector<8x384xf32>
    %c0_49 = arith.constant 0 : index
    %c0_50 = arith.constant 0 : index
    %c0_51 = arith.constant 0 : index
    %47 = vector.load %arg4[%c0_49, %c0_50, %c0_51] : memref<1x16x384xf32, #tpu.memory_space<vmem>>, vector<1x8x384xf32>
    %48 = vector.shape_cast %47 : vector<1x8x384xf32> to vector<8x384xf32>
    %49 = vector.shape_cast %46 : vector<8x384xf32> to vector<1x8x384xf32>
    tpu.vector_store %arg4[%c0_49, %c0_50, %c0_51], %49 {strides = array<i32>} : memref<1x16x384xf32, #tpu.memory_space<vmem>>, vector<1x8x384xf32>,
    %50 = vector.extract_strided_slice %45 {offsets = [0, 384], sizes = [8, 384], strides = [1, 1]} : vector<8x768xf32> to vector<8x384xf32>
    %c0_52 = arith.constant 0 : index
    %c8_53 = arith.constant 8 : index
    %c0_54 = arith.constant 0 : index
    %51 = vector.load %arg4[%c0_52, %c8_53, %c0_54] : memref<1x16x384xf32, #tpu.memory_space<vmem>>, vector<1x8x384xf32>
    %52 = vector.shape_cast %51 : vector<1x8x384xf32> to vector<8x384xf32>
    %53 = vector.shape_cast %50 : vector<8x384xf32> to vector<1x8x384xf32>
    tpu.vector_store %arg4[%c0_52, %c8_53, %c0_54], %53 {strides = array<i32>} : memref<1x16x384xf32, #tpu.memory_space<vmem>>, vector<1x8x384xf32>,
    return
  }
  func.func @transform_0(%arg0: i32) -> (i32, i32, i32) {
    %c0_i32 = arith.constant 0 : i32
    %c0_i32_0 = arith.constant 0 : i32
    %c0_i32_1 = arith.constant 0 : i32
    return %arg0, %c0_i32, %c0_i32_0 : i32, i32, i32
  }
  func.func @transform_1(%arg0: i32) -> (i32, i32) {
    %c0_i32 = arith.constant 0 : i32
    %c0_i32_0 = arith.constant 0 : i32
    %c0_i32_1 = arith.constant 0 : i32
    return %c0_i32, %c0_i32_0 : i32, i32
  }
  func.func @transform_2(%arg0: i32) -> (i32, i32) {
    %c0_i32 = arith.constant 0 : i32
    %c0_i32_0 = arith.constant 0 : i32
    %c0_i32_1 = arith.constant 0 : i32
    return %c0_i32, %c0_i32_0 : i32, i32
  }
  func.func @transform_3(%arg0: i32) -> (i32, i32, i32) {
    %c0_i32 = arith.constant 0 : i32
    %c0_i32_0 = arith.constant 0 : i32
    %c0_i32_1 = arith.constant 0 : i32
    return %arg0, %c0_i32, %c0_i32_0 : i32, i32, i32
  }
}

</mosaic_0001>

<bundles_post_ra>
// kernel: _cr_forward.1
= control target key start
LH: loop header
LB: loop body
LE: loop exit
PB: predicated region body
PF: predicated region fallthrough
CT: control target
= control target key end

     0   :  { %s700_s20 = smov 126   ;;  %s701_s21 = smov 127   ;;  %v707_v10 = vmov 0.0   ;;  %v709_v15 = vmov 0   ;;  %vm30_vm0 = vcmask 1039360   ;;  %vm45_vm1 = vcmask 1031168   ;;  %s992_s0 = inlined_call_operand.vmem [shape: f32[1,16,432], index: 0, kind: input, shape index: {}]   ;;  %s993_s2 = inlined_call_operand.vmem [shape: f32[8,1], index: 2, kind: input, shape index: {}]   ;;  %s994_s1 = inlined_call_operand.vmem [shape: f32[8,72], index: 1, kind: input, shape index: {}]   ;;  %s995_s3 = inlined_call_operand.vmem [shape: f32[1,16,384], index: 3, kind: output, shape index: {}]  }
   0x1   :  { %v733_v0 = vld [vmem:[%s992_s0 + $0x8] sm:$0xff]  ;;  %v738_v1 = vld [vmem:[%s992_s0 + $0x10] sm:$0xff]  ;;  %v743_v2 = vld [vmem:[%s992_s0] sm:$0xff]  ;;  %s702_s22 = smov 110   ;;  %s703_s23 = smov 108   ;;  %337 = vmatprep.mubr.f32.mxu0 %v707_v10  ;;  %408 = vmatprep.mubr.f32.mxu1 %v707_v10  ;;  %vm60_vm2 = vcmask 900096  }
   0x2   :  { %v573_v3 = vpack.i.bf16 %v738_v1, %v733_v0  ;;  %v750_v4 = vld [vmem:[%s992_s0 + $0x20] sm:$0xff]  ;;  %s704_s24 = smov 109   ;;  %s705_s25 = smov 91   ;;  %v17_v6 = vld [vmem:[%s992_s0 + $0x18] sm:$0xff]  ;;  %v778_v8 = vld [vmem:[%s992_s0 + $0x28] sm:$0xff]  ;;  %698 = vset.pattern.permute.xlu1 %v709_v15  ;;  %699 = vset.pattern.permute.xlu0 %v709_v15  ;;  %vm75_vm3 = vcmask 891904  }
   0x3   :  { %v568_v5 = vpack.i.bf16 %v750_v4, %v743_v2  ;;  %s706_s26 = smov 92   ;;  %v145_v7 = vld [vmem:[%s992_s0 + $0x38] sm:$0xff]  ;;  %v783_v9 = vld [vmem:[%s992_s0 + $0x30] sm:$0xff]  ;;  %s708_s8 = smov 90   ;;  %v688_v13 = vpack.i.bf16 %v778_v8, %v750_v4  ;;  %v263_v16 = vld [vmem:[%s993_s2] sm:$0xff]  ;;  %vm90_vm4 = vcmask 883712  }
   0x4   :  { %574 = vrot.lane.b32.xlu1 %v573_v3, %s700_s20  ;;  %564 = vrot.lane.b32.xlu0 %v573_v3, %s701_s21  ;;  %v633_v11 = vpack.i.bf16 %v17_v6, %v145_v7  ;;  %v628_v12 = vpack.i.bf16 %v783_v9, %v778_v8  ;;  %v693_v14 = vpack.i.bf16 %v145_v7, %v783_v9  ;;  %vm120_vm5 = vcmask 744448  }
   0x5   :  { %vm105_vm6 = vcmask 752640   ;;  %vm135_vm7 = vcmask 736256   ;;  %vm269_vm8 = vcmask 588800  }
   0x8   :  { %579 = vrot.lane.b32.xlu1 %v573_v3, %s702_s22  ;;  %569 = vrot.lane.b32.xlu0 %v568_v5, %s701_s21 }
   0xc   :  { %589 = vrot.lane.b32.xlu1 %v568_v5, %s702_s22  ;;  %584 = vrot.lane.b32.xlu0 %v568_v5, %s700_s20 }
  0x10   :  { %599 = vrot.lane.b32.xlu1 %v573_v3, %s703_s23  ;;  %594 = vrot.lane.b32.xlu0 %v573_v3, %s704_s24 }
  0x14   :  { %609 = vrot.lane.b32.xlu1 %v568_v5, %s703_s23  ;;  %604 = vrot.lane.b32.xlu0 %v568_v5, %s704_s24 }
  0x18   :  { %619 = vrot.lane.b32.xlu1 %v573_v3, %s705_s25  ;;  %614 = vrot.lane.b32.xlu0 %v573_v3, %s706_s26 }
  0x1c   :  { %112 = vrot.lane.b32.xlu1 %v743_v2, %s705_s25  ;;  %624 = vrot.lane.b32.xlu0 %v568_v5, %s706_s26 }
  0x20   :  { %131 = vrot.lane.b32.xlu1 %v738_v1, %s708_s8  ;;  %129 = vrot.lane.b32.xlu0 %v733_v0, %s708_s8 }
  0x24   :  { %634 = vrot.lane.b32.xlu1 %v633_v11, %s701_s21  ;;  %629 = vrot.lane.b32.xlu0 %v628_v12, %s701_s21 }
  0x28   :  { %639 = vrot.lane.b32.xlu1 %v628_v12, %s700_s20  ;;  %127 = vrot.lane.b32.xlu0 %v743_v2, %s708_s8 }
  0x2c   :  { %649 = vrot.lane.b32.xlu1 %v628_v12, %s702_s22  ;;  %644 = vrot.lane.b32.xlu0 %v633_v11, %s700_s20 }
  0x30   :  { %659 = vrot.lane.b32.xlu1 %v628_v12, %s704_s24  ;;  %654 = vrot.lane.b32.xlu0 %v633_v11, %s702_s22 }
  0x34   :  { %669 = vrot.lane.b32.xlu1 %v628_v12, %s703_s23  ;;  %664 = vrot.lane.b32.xlu0 %v633_v11, %s704_s24 }
  0x38   :  { %679 = vrot.lane.b32.xlu1 %v628_v12, %s706_s26  ;;  %674 = vrot.lane.b32.xlu0 %v633_v11, %s703_s23 }
  0x3c   :  { %689 = vrot.lane.b32.xlu1 %v688_v13, %s705_s25  ;;  %684 = vrot.lane.b32.xlu0 %v633_v11, %s706_s26 }
  0x40   :  { %118 = vrot.lane.b32.xlu1 %v17_v6, %s705_s25  ;;  %694 = vrot.lane.b32.xlu0 %v693_v14, %s705_s25 }
  0x44   :  { %250 = vrot.lane.b32.xlu1 %v778_v8, %s708_s8  ;;  %248 = vrot.lane.b32.xlu0 %v750_v4, %s708_s8 }
  0x48   :  { %254 = vrot.lane.b32.xlu1 %v145_v7, %s708_s8  ;;  %252 = vrot.lane.b32.xlu0 %v783_v9, %s708_s8 }
  0x4c   :  { %133 = vrot.lane.b32.xlu0 %v17_v6, %s708_s8  ;;  %266 = vperm.xlu1 %698, %v263_v16  }
  0x76   :  { %v824_v17 = vpop.permute.xlu1 %574  ;;  %v826_v18 = vpop.permute.xlu0 %564 }
  0x77   :  { %v577_v19 = vunpack.i.h.bf16 %v824_v17  ;;  %v576_v20 = vunpack.i.l.bf16 %v824_v17  ;;  %v567_v21 = vunpack.i.h.bf16 %v826_v18  ;;  %v566_v22 = vunpack.i.l.bf16 %v826_v18  ;;  %v918_v18 = vld [vmem:[%s994_s1] sm:$0xff] }
  0x79   :  { %v32_v23 = vsel %vm30_vm0, %v566_v22, %v567_v21  ;;  %v47_v30 = vsel %vm45_vm1, %v576_v20, %v577_v19 }
  0x7a   :  { %v835_v24 = vpop.permute.xlu1 %579  ;;  %v837_v25 = vpop.permute.xlu0 %569  ;;  %v505_v26 = vpack.c.bf16 %v32_v23, %v733_v0 }
  0x7b   :  { %v582_v27 = vunpack.i.h.bf16 %v835_v24  ;;  %v581_v28 = vunpack.i.l.bf16 %v835_v24  ;;  %v571_v29 = vunpack.i.l.bf16 %v837_v25 }
  0x7c   :  { %506 = vmatprep.subr.bf16.mxu0 %v505_v26 }
  0x7d   :  { %v31_v31 = vsel %vm30_vm0, %v571_v29, %v566_v22  ;;  %v62_v32 = vsel %vm60_vm2, %v581_v28, %v582_v27 }
  0x7e   :  { %v850_v33 = vpop.permute.xlu1 %589  ;;  %v852_v34 = vpop.permute.xlu0 %584  ;;  %v507_v35 = vpack.c.bf16 %v31_v31, %v743_v2  ;;  %v509_v36 = vpack.c.bf16 %v62_v32, %v47_v30 }
  0x7f   :  { %v591_v37 = vunpack.i.l.bf16 %v850_v33  ;;  %v586_v38 = vunpack.i.l.bf16 %v852_v34 }
  0x80   :  { %508 = vmatpush1.bf16.msra.mxu0 %v507_v35 }
  0x81   :  { %510 = vmatprep.subr.bf16.mxu0 %v509_v36  ;;  %v46_v39 = vsel %vm45_vm1, %v586_v38, %v576_v20  ;;  %v61_v40 = vsel %vm60_vm2, %v591_v37, %v581_v28  ;;  %v572_v20 = vunpack.i.h.bf16 %v837_v25 }
  0x82   :  { %v859_v41 = vpop.permute.xlu1 %599  ;;  %v861_v42 = vpop.permute.xlu0 %594  ;;  %v511_v43 = vpack.c.bf16 %v61_v40, %v46_v39 }
  0x83   :  { %v602_v44 = vunpack.i.h.bf16 %v859_v41  ;;  %v601_v45 = vunpack.i.l.bf16 %v859_v41  ;;  %v597_v46 = vunpack.i.h.bf16 %v861_v42  ;;  %v596_v47 = vunpack.i.l.bf16 %v861_v42 }
  0x84   :  { %512 = vmatpush1.bf16.msra.mxu0 %v511_v43 }
  0x85   :  { %v77_v48 = vsel %vm75_vm3, %v596_v47, %v597_v46  ;;  %v92_v49 = vsel %vm90_vm4, %v601_v45, %v602_v44 }
  0x86   :  { %v873_v50 = vpop.permute.xlu1 %609  ;;  %v875_v51 = vpop.permute.xlu0 %604  ;;  %v513_v52 = vpack.c.bf16 %v92_v49, %v77_v48 }
  0x87   :  { %v611_v53 = vunpack.i.l.bf16 %v873_v50  ;;  %v606_v54 = vunpack.i.l.bf16 %v875_v51 }
  0x88   :  { %514 = vmatprep.subr.bf16.mxu0 %v513_v52 }
  0x89   :  { %v76_v55 = vsel %vm75_vm3, %v606_v54, %v596_v47  ;;  %v91_v56 = vsel %vm90_vm4, %v611_v53, %v601_v45 }
  0x8a   :  { %v881_v57 = vpop.permute.xlu1 %619  ;;  %v883_v58 = vpop.permute.xlu0 %614  ;;  %v515_v59 = vpack.c.bf16 %v91_v56, %v76_v55 }
  0x8b   :  { %v622_v60 = vunpack.i.h.bf16 %v881_v57  ;;  %v621_v61 = vunpack.i.l.bf16 %v881_v57  ;;  %v617_v62 = vunpack.i.h.bf16 %v883_v58  ;;  %v616_v63 = vunpack.i.l.bf16 %v883_v58 }
  0x8c   :  { %516 = vmatpush1.bf16.msra.mxu0 %v515_v59 }
  0x8d   :  { %v107_v0 = vsel %vm105_vm6, %v616_v63, %v617_v62  ;;  %v122_v2 = vsel %vm120_vm5, %v621_v61, %v622_v60 }
  0x8e   :  { %v113_v3 = vpop.permute.xlu1 %112  ;;  %v895_v5 = vpop.permute.xlu0 %624  ;;  %v517_v6 = vpack.c.bf16 %v122_v2, %v107_v0 }
  0x8f   :  { %v121_v7 = vsel %vm120_vm5, %v113_v3, %v621_v61  ;;  %v626_v11 = vunpack.i.l.bf16 %v895_v5 }
  0x90   :  { %518 = vmatprep.subr.bf16.mxu0 %v517_v6 }
  0x91   :  { %v106_v12 = vsel %vm105_vm6, %v626_v11, %v616_v63 }
  0x92   :  { %v900_v13 = vpop.permute.xlu1 %131  ;;  %v130_v14 = vpop.permute.xlu0 %129  ;;  %v519_v15 = vpack.c.bf16 %v121_v7, %v106_v12 }
  0x93   :  { %v137_v16 = vsel %vm135_vm7, %v130_v14, %v900_v13 }
  0x94   :  { %520 = vmatpush1.bf16.msra.mxu0 %v519_v15 }
  0x95   :  { %289 = vmatprep.subr.mxu0 %v137_v16  ;;  %v612_v16 = vunpack.i.h.bf16 %v873_v50 }
  0x96   :  { %v635_v22 = vpop.permute.xlu1 %634  ;;  %v630_v23 = vpop.permute.xlu0 %629 }
  0x97   :  { %v637_v26 = vunpack.i.h.bf16 %v635_v22  ;;  %v636_v28 = vunpack.i.l.bf16 %v635_v22  ;;  %v632_v29 = vunpack.i.h.bf16 %v630_v23  ;;  %v631_v30 = vunpack.i.l.bf16 %v630_v23 }
  0x99   :  { %v158_v31 = vsel %vm30_vm0, %v572_v20, %v631_v30  ;;  %v33_v32 = vsel %vm30_vm0, %v567_v21, %v637_v26  ;;  %v160_v35 = vsel %vm30_vm0, %v632_v29, %v636_v28  ;;  %v159_v36 = vsel %vm30_vm0, %v631_v30, %v632_v29 }
  0x9a   :  { %v640_v37 = vpop.permute.xlu1 %639  ;;  %v128_v38 = vpop.permute.xlu0 %127  ;;  %v521_v25 = vpack.c.bf16 %v158_v31, %v750_v4  ;;  %v523_v39 = vpack.c.bf16 %v33_v32, %v738_v1  ;;  %v537_v40 = vpack.c.bf16 %v160_v35, %v783_v9  ;;  %v539_v21 = vpack.c.bf16 %v159_v36, %v778_v8 }
  0x9b   :  { %v136_v43 = vsel %vm135_vm7, %v128_v38, %v130_v14  ;;  %v641_v45 = vunpack.i.l.bf16 %v640_v37  ;;  %v592_v1 = vunpack.i.h.bf16 %v850_v33  ;;  %v587_v9 = vunpack.i.h.bf16 %v852_v34 }
  0x9c   :  { %290 = vmatpush1.msra.mxu0 %v136_v43  ;;  %522 = vmatprep.subr.bf16.mxu1 %v521_v25  ;;  %v642_v49 = vunpack.i.h.bf16 %v640_v37  ;;  %v607_v20 = vunpack.i.h.bf16 %v875_v51 }
  0x9d   :  { %524 = vmatpush1.bf16.msra.mxu1 %v523_v39  ;;  %538 = vmatprep.subr.bf16.mxu0 %v537_v40  ;;  %v172_v54 = vsel %vm45_vm1, %v587_v9, %v641_v45  ;;  %v627_v40 = vunpack.i.h.bf16 %v895_v5 }
  0x9e   :  { %v650_v4 = vpop.permute.xlu1 %649  ;;  %v645_v47 = vpop.permute.xlu0 %644  ;;  %502 = vmatmul.mubr.msk.f32.vlgmr.msra.gmra.mrb[0].mxu0 %vm269_vm8, %v918_v18  ;;  %v173_v33 = vsel %vm45_vm1, %v641_v45, %v642_v49 }
  0x9f   :  { %v651_v48 = vunpack.i.l.bf16 %v650_v4  ;;  %540 = vmatpush1.bf16.msra.mxu0 %v539_v21  ;;  %479 = vmatprep.mubr.f32.mxu0 %v707_v10  ;;  %v652_v52 = vunpack.i.h.bf16 %v650_v4  ;;  %v647_v53 = vunpack.i.h.bf16 %v645_v47  ;;  %v646_v8 = vunpack.i.l.bf16 %v645_v47 }
  0xa1   :  { %v186_v55 = vsel %vm60_vm2, %v592_v1, %v651_v48  ;;  %v187_v34 = vsel %vm60_vm2, %v651_v48, %v652_v52  ;;  %v48_v10 = vsel %vm45_vm1, %v577_v19, %v647_v53  ;;  %v174_v6 = vsel %vm45_vm1, %v642_v49, %v646_v8 }
  0xa2   :  { %v660_v56 = vpop.permute.xlu1 %659  ;;  %v655_v59 = vpop.permute.xlu0 %654  ;;  %v525_v61 = vpack.c.bf16 %v186_v55, %v172_v54  ;;  %v543_v17 = vpack.c.bf16 %v187_v34, %v173_v33 }
  0xa3   :  { %v657_v63 = vunpack.i.h.bf16 %v655_v59  ;;  %v656_v0 = vunpack.i.l.bf16 %v655_v59  ;;  %v661_v2 = vunpack.i.l.bf16 %v660_v56  ;;  %v662_v19 = vunpack.i.h.bf16 %v660_v56 }
  0xa4   :  { %526 = vmatprep.subr.bf16.mxu1 %v525_v61 }
  0xa5   :  { %v63_v3 = vsel %vm60_vm2, %v582_v27, %v657_v63  ;;  %v188_v7 = vsel %vm60_vm2, %v652_v52, %v656_v0  ;;  %v200_v27 = vsel %vm75_vm3, %v607_v20, %v661_v2  ;;  %v201_v51 = vsel %vm75_vm3, %v661_v2, %v662_v19 }
  0xa6   :  { %v670_v11 = vpop.permute.xlu1 %669  ;;  %v665_v12 = vpop.permute.xlu0 %664  ;;  %v527_v14 = vpack.c.bf16 %v63_v3, %v48_v10  ;;  %v541_v15 = vpack.c.bf16 %v188_v7, %v174_v6 }
  0xa7   :  { %v671_v22 = vunpack.i.l.bf16 %v670_v11  ;;  %v672_v23 = vunpack.i.h.bf16 %v670_v11  ;;  %v667_v26 = vunpack.i.h.bf16 %v665_v12  ;;  %v666_v24 = vunpack.i.l.bf16 %v665_v12 }
  0xa8   :  { %528 = vmatpush1.bf16.msra.mxu1 %v527_v14  ;;  %542 = vmatprep.subr.bf16.mxu0 %v541_v15 }
  0xa9   :  { %544 = vmatpush1.bf16.msra.mxu0 %v543_v17  ;;  %v214_v28 = vsel %vm90_vm4, %v612_v16, %v671_v22  ;;  %v215_v35 = vsel %vm90_vm4, %v671_v22, %v672_v23  ;;  %v78_v36 = vsel %vm75_vm3, %v597_v46, %v667_v26  ;;  %v202_v25 = vsel %vm75_vm3, %v662_v19, %v666_v24 }
  0xaa   :  { %v680_v29 = vpop.permute.xlu1 %679  ;;  %v675_v30 = vpop.permute.xlu0 %674  ;;  %v529_v31 = vpack.c.bf16 %v214_v28, %v200_v27  ;;  %v547_v47 = vpack.c.bf16 %v215_v35, %v201_v51 }
  0xab   :  { %v677_v32 = vunpack.i.h.bf16 %v675_v30  ;;  %v676_v50 = vunpack.i.l.bf16 %v675_v30  ;;  %v681_v37 = vunpack.i.l.bf16 %v680_v29  ;;  %v682_v46 = vunpack.i.h.bf16 %v680_v29 }
  0xac   :  { %530 = vmatprep.subr.bf16.mxu1 %v529_v31 }
  0xad   :  { %v93_v38 = vsel %vm90_vm4, %v602_v44, %v677_v32  ;;  %v216_v39 = vsel %vm90_vm4, %v672_v23, %v676_v50  ;;  %v228_v44 = vsel %vm105_vm6, %v627_v40, %v681_v37  ;;  %v229_v59 = vsel %vm105_vm6, %v681_v37, %v682_v46 }
  0xae   :  { %v690_v43 = vpop.permute.xlu1 %689  ;;  %v685_v21 = vpop.permute.xlu0 %684  ;;  %v531_v45 = vpack.c.bf16 %v93_v38, %v78_v36  ;;  %v545_v4 = vpack.c.bf16 %v216_v39, %v202_v25 }
  0xaf   :  { %v692_v1 = vunpack.i.h.bf16 %v690_v43  ;;  %v691_v42 = vunpack.i.l.bf16 %v690_v43  ;;  %v687_v9 = vunpack.i.h.bf16 %v685_v21  ;;  %v686_v41 = vunpack.i.l.bf16 %v685_v21 }
  0xb0   :  { %532 = vmatpush1.bf16.msra.mxu1 %v531_v45  ;;  %546 = vmatprep.subr.bf16.mxu0 %v545_v4 }
  0xb1   :  { %548 = vmatpush1.bf16.msra.mxu0 %v547_v47  ;;  %v242_v48 = vsel %vm120_vm5, %v691_v42, %v692_v1  ;;  %v108_v53 = vsel %vm105_vm6, %v617_v62, %v687_v9  ;;  %v230_v63 = vsel %vm105_vm6, %v682_v46, %v686_v41 }
  0xb2   :  { %v119_v49 = vpop.permute.xlu1 %118  ;;  %v695_v52 = vpop.permute.xlu0 %694  ;;  %v533_v5 = vpack.c.bf16 %v242_v48, %v228_v44 }
  0xb3   :  { %v123_v8 = vsel %vm120_vm5, %v622_v60, %v119_v49  ;;  %v697_v54 = vunpack.i.h.bf16 %v695_v52  ;;  %v696_v55 = vunpack.i.l.bf16 %v695_v52 }
  0xb4   :  { %v535_v56 = vpack.c.bf16 %v123_v8, %v108_v53  ;;  %534 = vmatprep.subr.bf16.mxu1 %v533_v5 }
  0xb5   :  { %v243_v61 = vsel %vm120_vm5, %v692_v1, %v696_v55  ;;  %v244_v0 = vsel %vm120_vm5, %v696_v55, %v697_v54 }
  0xb6   :  { %v551_v33 = vpack.c.bf16 %v243_v61, %v229_v59  ;;  %v251_v58 = vpop.permute.xlu1 %250  ;;  %v249_v34 = vpop.permute.xlu0 %248  ;;  %536 = vmatpush1.bf16.msra.mxu1 %v535_v56  ;;  %v549_v62 = vpack.c.bf16 %v244_v0, %v230_v63 }
  0xb7   :  { %v256_v57 = vsel %vm135_vm7, %v249_v34, %v251_v58 }
  0xb8   :  { %360 = vmatprep.subr.mxu1 %v256_v57  ;;  %550 = vmatprep.subr.bf16.mxu0 %v549_v62 }
  0xb9   :  { %552 = vmatpush1.bf16.msra.mxu0 %v551_v33 }
  0xba   :  { %v255_v60 = vpop.permute.xlu1 %254  ;;  %v253_v10 = vpop.permute.xlu0 %252 }
  0xbb   :  { %v257_v2 = vsel %vm135_vm7, %v251_v58, %v253_v10  ;;  %v258_v3 = vsel %vm135_vm7, %v253_v10, %v255_v60 }
  0xbc   :  { %431 = vmatprep.subr.mxu0 %v258_v3 }
  0xbd   :  { %432 = vmatpush1.msra.mxu0 %v257_v2 }
  0xbe   :  { %v134_v6 = vpop.permute.xlu0 %133  ;;  %504 = vmatmul.mubr.msk.f32.vlgmr.msra.gmra.mrb[2].mxu0 %vm269_vm8, %v918_v18 }
  0xbf   :  { %v138_v7 = vsel %vm135_vm7, %v900_v13, %v134_v6 }
  0xc0   :  { %361 = vmatpush1.msra.mxu1 %v138_v7 }
  0xc1   :  { %503 = vmatmul.mubr.msk.f32.vlgmr.msra.gmra.mrb[0].mxu1 %vm269_vm8, %v918_v18 }
  0xcb   :  { %v267_v11 = vpop.permute.xlu1 %266 }
 0x171   :  { %v339_v12 = vpop.f32.mrb[0].mxu0 }
 0x172   :  { %v340_v14 = vadd.f32 %v339_v12, %v267_v11  ;;  %v341_v15 = vpop.f32.mrb[1].mxu0 }
 0x173   :  { %v342_v16 = vadd.f32 %v341_v15, %v267_v11 }
 0x174   :  { %v486_v20 = vmax.f32 %v340_v14, 0.0 }
 0x175   :  { %v487_v17 = vmax.f32 %v342_v16, 0.0 }
 0x176   :  { %492 = vst [vmem:[%s995_s3] sm:$0xff] %v486_v20 }
 0x177   :  { %493 = vst [vmem:[%s995_s3 + $0x8] sm:$0xff] %v487_v17 }
 0x191   :  { %v481_v13 = vpop.f32.mrb[2].mxu0 }
 0x192   :  { %v482_v22 = vadd.f32 %v481_v13, %v267_v11  ;;  %v483_v19 = vpop.f32.mrb[3].mxu0 }
 0x193   :  { %v484_v23 = vadd.f32 %v483_v19, %v267_v11 }
 0x194   :  { %v490_v18 = vmax.f32 %v482_v22, 0.0  ;;  %v410_v26 = vpop.f32.mrb[0].mxu1 }
 0x195   :  { %v411_v24 = vadd.f32 %v410_v26, %v267_v11  ;;  %v491_v27 = vmax.f32 %v484_v23, 0.0  ;;  %v412_v28 = vpop.f32.mrb[1].mxu1 }
 0x196   :  { %496 = vst [vmem:[%s995_s3 + $0x20] sm:$0xff] %v490_v18  ;;  %v413_v29 = vadd.f32 %v412_v28, %v267_v11 }
 0x197   :  { %v488_v30 = vmax.f32 %v411_v24, 0.0  ;;  %497 = vst [vmem:[%s995_s3 + $0x28] sm:$0xff] %v491_v27 }
 0x198   :  { %v489_v31 = vmax.f32 %v413_v29, 0.0 }
 0x199   :  { %494 = vst [vmem:[%s995_s3 + $0x10] sm:$0xff] %v488_v30 }
 0x19a   :  { %495 = vst [vmem:[%s995_s3 + $0x18] sm:$0xff] %v489_v31 }

</bundles_post_ra>
